<compile_context>
chip_gen: v5e
topology: v5e:2x2
jax: 0.10.0
libtpu: 0.0.40
codegen_flags: <defaults>
</compile_context>

<pallas_src>
import math
from functools import partial

import jax
import jax.numpy as jnp
from jax.experimental import pallas as pl
from jax.experimental.pallas import tpu as pltpu


def _round_up(a, b):
    return ((a + b - 1) // b) * b


# ----------------------------------------------------------------------------
# Kernels
# ----------------------------------------------------------------------------
def _stft_overlap_kernel(g_ref, bt_ref, bb_ref, out_ref):
    """hop == n_dft/2 fast path: frame overlap reconstructed in-kernel.

    g_ref   : (tr, hop)  un-duplicated half-frames (window folded into basis)
    bt_ref  : (hop, tn)  basis rows [0, hop)     -> contribution of half f
    bb_ref  : (hop, tn)  basis rows [hop, n_dft) -> contribution of half f+1
    out_ref : (tr, tn)   row m = spectrum of frame m; rows with
                         m % n_halves == n_halves-1 are garbage and are sliced
                         away by the wrapper (block rows are a multiple of
                         n_halves, so the roll wrap-around only hits them).
    """
    g = g_ref[...]
    ct = jnp.dot(g, bt_ref[...], preferred_element_type=jnp.float32)
    cb = jnp.dot(g, bb_ref[...], preferred_element_type=jnp.float32)
    # out[m] = ct[m] + cb[m + 1]; static jnp.roll lowers to a cheap sublane
    # concat (XLU), keeping the VALU free for the adds.
    out_ref[...] = ct + jnp.roll(cb, shift=-1, axis=0)


def _stft_dense_kernel(frames_ref, basis_ref, out_ref):
    """Generic-hop fallback: explicit frames @ (hann-folded DFT basis)."""
    out_ref[...] = jnp.dot(
        frames_ref[...], basis_ref[...], preferred_element_type=jnp.float32
    )


# ----------------------------------------------------------------------------
# pallas_call wrappers
# ----------------------------------------------------------------------------
def _stft_overlap_matmul(g, basis_top, basis_bot, *, tr, tn):
    rows, hop = g.shape
    F2 = basis_top.shape[1]
    assert rows % tr == 0 and F2 % tn == 0
    grid = (rows // tr, F2 // tn)

    itemsize = g.dtype.itemsize
    # Single-buffer the grid-invariant basis only once it is big enough to
    # matter (keeps the small-shape config identical to the known-good one).
    basis_big = hop * tn * itemsize > (2 << 20)
    basis_kwargs = {"pipeline_mode": pl.Buffered(1)} if basis_big else {}

    # Scoped-VMEM budget from the actual buffer sizes (double-buffered LHS/out,
    # two basis operands); clamp below v7x's 64 MiB physical VMEM.
    need = (2 * tr * hop * itemsize
            + (2 if basis_big else 4) * hop * tn * itemsize
            + 2 * tr * tn * 4)
    vmem_limit = int(min(48 << 20, max(32 << 20, int(need * 1.5))))

    cost = pl.CostEstimate(
        flops=4 * rows * hop * F2,          # two (rows,hop)x(hop,F2) matmuls
        transcendentals=0,
        bytes_accessed=rows * hop * itemsize + 2 * hop * F2 * itemsize
        + rows * F2 * 4,
    )

    return pl.pallas_call(
        _stft_overlap_kernel,
        out_shape=jax.ShapeDtypeStruct((rows, F2), jnp.float32),
        grid_spec=pltpu.PrefetchScalarGridSpec(
            num_scalar_prefetch=0,
            grid=grid,
            in_specs=[
                pl.BlockSpec((tr, hop), lambda i, j: (i, 0)),
                pl.BlockSpec((hop, tn), lambda i, j: (0, j), **basis_kwargs),
                pl.BlockSpec((hop, tn), lambda i, j: (0, j), **basis_kwargs),
            ],
            out_specs=pl.BlockSpec((tr, tn), lambda i, j: (i, j)),
        ),
        compiler_params=pltpu.CompilerParams(
            dimension_semantics=("parallel", "parallel"),
            vmem_limit_bytes=vmem_limit,
        ),
        cost_estimate=cost,
    )(g, basis_top, basis_bot)


def _stft_dense_matmul(frames, basis, *, tm):
    M, K = frames.shape
    F2 = basis.shape[1]
    assert M % tm == 0
    itemsize = frames.dtype.itemsize
    need = 2 * tm * K * itemsize + 2 * K * F2 * itemsize + 2 * tm * F2 * 4
    vmem_limit = int(min(48 << 20, max(32 << 20, int(need * 1.5))))
    cost = pl.CostEstimate(
        flops=2 * M * K * F2,
        transcendentals=0,
        bytes_accessed=M * K * itemsize + K * F2 * itemsize + M * F2 * 4,
    )
    return pl.pallas_call(
        _stft_dense_kernel,
        out_shape=jax.ShapeDtypeStruct((M, F2), jnp.float32),
        grid_spec=pltpu.PrefetchScalarGridSpec(
            num_scalar_prefetch=0,
            grid=(M // tm,),
            in_specs=[
                pl.BlockSpec((tm, K), lambda i: (i, 0)),
                pl.BlockSpec((K, F2), lambda i: (0, 0)),
            ],
            out_specs=pl.BlockSpec((tm, F2), lambda i: (i, 0)),
        ),
        compiler_params=pltpu.CompilerParams(
            dimension_semantics=("parallel",),
            vmem_limit_bytes=vmem_limit,
        ),
        cost_estimate=cost,
    )(frames, basis)


# ----------------------------------------------------------------------------
# StftArray forward (JAX glue + Pallas hot path)
# ----------------------------------------------------------------------------
def _dft_basis(n_dft, n_freq, k_start, dtype):
    """One-sided DFT basis with the periodic hann window folded in: (N, 2F)."""
    n = jnp.arange(n_dft, dtype=jnp.float32)
    window = 0.5 * (1.0 - jnp.cos(2.0 * math.pi * n / n_dft))   # hann(periodic)
    ni = jnp.arange(n_dft, dtype=jnp.int32)[:, None]
    ki = jnp.arange(k_start, k_start + n_freq, dtype=jnp.int32)[None, :]
    # keep the phase argument small for f32 accuracy: (n*k) mod N
    phase = (2.0 * math.pi / n_dft) * ((ni * ki) % n_dft).astype(jnp.float32)
    basis = jnp.concatenate([jnp.cos(phase), -jnp.sin(phase)], axis=1)  # (N,2F)
    basis = basis * window[:, None]     # diag(w) @ DFT == windowing each frame
    return basis.astype(dtype)


def stft_array_forward(x, *, n_dft=256, hop_size=128, remove_dc=True,
                       use_bf16=True):
    """x: (B, C, T) f32 -> (B, C, n_frames, n_freq) complex64."""
    B, C, T = x.shape
    N, hop, BC = n_dft, hop_size, B * C
    compute_dtype = jnp.bfloat16 if use_bf16 else jnp.float32
    itemsize = jnp.dtype(compute_dtype).itemsize

    k_start = 1 if remove_dc else 0
    n_freq = N // 2 + 1 - k_start
    F2 = 2 * n_freq
    basis = _dft_basis(N, n_freq, k_start, compute_dtype)       # (N, 2F)

    # center=True, pad_mode='reflect'. Cast to the compute dtype BEFORE padding
    # / framing so no f32 copy of the (padded) signal is ever written to HBM.
    x_flat = x.reshape(BC, T).astype(compute_dtype)
    x_pad = jnp.pad(x_flat, ((0, 0), (N // 2, N // 2)), mode="reflect")
    T_pad = T + 2 * (N // 2)
    n_frames = 1 + T // hop

    # Frequency tiling: keep basis / out blocks lane-dense (multiple of 128)
    # and bound the resident basis at large n_dft (v7x: 64 MiB VMEM).
    if F2 > 512 and F2 % 128 == 0:
        tn = 512
        while F2 % tn:
            tn -= 128
    else:
        tn = F2

    overlap = (N == 2 * hop) and (T % hop == 0)
    if overlap:
        n_halves = T_pad // hop                  # == n_frames + 1
        # Row tile: whole problem when small (no forced >=2 grid steps on
        # single-TC chips); otherwise ~1024 rows, aligned to both the sublane
        # (8) and batch (n_halves) boundaries.
        target_rows = 1024
        tb = max(1, min(BC, target_rows // max(n_halves, 1)))
        if tb < BC:
            step = 8 // math.gcd(n_halves, 8)    # tb*n_halves % 8 == 0
            tb = min(BC, _round_up(tb, step))
        BC_pad = BC if tb == BC else _round_up(BC, tb)
        tr = tb * n_halves
        blk_bytes = 2 * tr * hop * itemsize + 2 * tr * tn * 4 \
            + 4 * hop * tn * itemsize
        overlap = blk_bytes <= (40 << 20)        # else: dense fallback

    if overlap:
        # ---- module-default fast path: hop == n_dft/2 ------------------------
        # Un-duplicated half-frame matrix (free reshape of the padded signal);
        # the overlap is reconstructed inside the kernel, so no 2x frames
        # tensor is materialised in HBM.
        g = x_pad.reshape(BC * n_halves, hop)
        if BC_pad > BC:                          # single zero pad on the rows
            g = jnp.pad(g, ((0, (BC_pad - BC) * n_halves), (0, 0)))
        bt, bb = basis[:hop], basis[hop:]
        out = _stft_overlap_matmul(g, bt, bb, tr=tr, tn=tn)
        out = out.reshape(BC_pad, n_halves, F2)[:BC, :n_frames]
    else:
        # ---- generic-hop fallback: gathered frames + single dense matmul -----
        idx = jnp.arange(n_frames)[:, None] * hop + jnp.arange(N)[None, :]
        frames = x_pad[:, idx].reshape(BC * n_frames, N)
        M = BC * n_frames
        tm = M if M <= 1024 else 512
        M_pad = _round_up(M, tm)
        if M_pad > M:
            frames = jnp.pad(frames, ((0, M_pad - M), (0, 0)))
        out = _stft_dense_matmul(frames, basis, tm=tm)
        out = out[:M].reshape(BC, n_frames, F2)

    out = out.reshape(B, C, n_frames, F2)
    # rows ordered (b, c, frame) -> matches torch's transpose(1,2) + unflatten
    return jax.lax.complex(out[..., :n_freq], out[..., n_freq:])   # complex64


if __name__ == "__main__":
    # Small, module-consistent shapes: (batch=2, channels=4, time=1024),
    # n_dft=256, hop=128  ->  output (2, 4, 9, 128) complex64.
    key = jax.random.PRNGKey(0)
    B, C, T = 2, 4, 1024
    n_dft, hop = 256, 128
    x = jax.random.normal(key, (B, C, T), dtype=jnp.float32)

    # FFT-based reference with the same center/reflect/hann/onesided/remove-DC
    # semantics as torch.stft.
    def ref_stft(xv):
        nn = jnp.arange(n_dft, dtype=jnp.float32)
        w = 0.5 * (1.0 - jnp.cos(2.0 * math.pi * nn / n_dft))
        xf = xv.reshape(B * C, T)
        xp = jnp.pad(xf, ((0, 0), (n_dft // 2, n_dft // 2)), mode="reflect")
        nfr = 1 + T // hop
        idx = jnp.arange(nfr)[:, None] * hop + jnp.arange(n_dft)[None, :]
        fr = xp[:, idx] * w
        sp = jnp.fft.rfft(fr, axis=-1)[..., 1:]          # drop DC
        return sp.reshape(B, C, nfr, n_dft // 2).astype(jnp.complex64)

    y_ref = ref_stft(x)

    def rel_err(a, b):
        return float(jnp.linalg.norm(a - b) / jnp.linalg.norm(b))

    # Default bf16 MXU path.
    fwd = jax.jit(partial(stft_array_forward, n_dft=n_dft, hop_size=hop,
                          remove_dc=True, use_bf16=True))
    y = fwd(x)
    jax.block_until_ready(y)
    assert y.shape == (B, C, 1 + T // hop, n_dft // 2), y.shape
    assert y.dtype == jnp.complex64, y.dtype
    e_bf16 = rel_err(y, y_ref)
    assert e_bf16 < 1e-2, e_bf16

    # f32 escape hatch (accuracy parity with the torch float32 STFT).
    fwd32 = jax.jit(partial(stft_array_forward, n_dft=n_dft, hop_size=hop,
                            remove_dc=True, use_bf16=False))
    y32 = fwd32(x)
    jax.block_until_ready(y32)
    e_f32 = rel_err(y32, y_ref)
    assert e_f32 < 1e-4, e_f32

    print("KERNEL_OK")
</pallas_src>

<mosaic_0001>
module attributes {stable_mosaic.version = 11 : i64} {
  func.func @_stft_overlap_kernel(%arg0: i32, %arg1: i32, %arg2: memref<80x128xbf16, #tpu.memory_space<vmem>>, %arg3: memref<128x256xbf16, #tpu.memory_space<vmem>>, %arg4: memref<128x256xbf16, #tpu.memory_space<vmem>>, %arg5: memref<80x256xf32, #tpu.memory_space<vmem>>) attributes {dimension_semantics = [#tpu.dimension_semantics<parallel>, #tpu.dimension_semantics<parallel>], iteration_bounds = array<i64: 1, 1>, scalar_prefetch = 0 : i64, scratch_operands = 0 : i64, tpu.core_type = #tpu.core_type<tc>, window_params = [{transform_indices = @transform_0, window_bounds = array<i64: 80, 128>}, {transform_indices = @transform_1, window_bounds = array<i64: 128, 256>}, {transform_indices = @transform_2, window_bounds = array<i64: 128, 256>}, {transform_indices = @transform_3, window_bounds = array<i64: 80, 256>}]} {
    %c0 = arith.constant 0 : index
    %c0_0 = arith.constant 0 : index
    %0 = vector.load %arg2[%c0, %c0_0] : memref<80x128xbf16, #tpu.memory_space<vmem>>, vector<80x128xbf16>
    %c0_1 = arith.constant 0 : index
    %c0_2 = arith.constant 0 : index
    %1 = vector.load %arg3[%c0_1, %c0_2] : memref<128x256xbf16, #tpu.memory_space<vmem>>, vector<128x256xbf16>
    %cst = arith.constant dense<0.000000e+00> : vector<80x256xf32>
    %2 = tpu.matmul %0, %1, %cst {dimension_numbers = #tpu.dot_dimension_numbers<[1], [0], [0], [1], [0, 0, 1, 1], [], []>} : vector<80x128xbf16>, vector<128x256xbf16>, vector<80x256xf32> -> vector<80x256xf32>
    %c0_3 = arith.constant 0 : index
    %c0_4 = arith.constant 0 : index
    %3 = vector.load %arg4[%c0_3, %c0_4] : memref<128x256xbf16, #tpu.memory_space<vmem>>, vector<128x256xbf16>
    %cst_5 = arith.constant dense<0.000000e+00> : vector<80x256xf32>
    %4 = tpu.matmul %0, %3, %cst_5 {dimension_numbers = #tpu.dot_dimension_numbers<[1], [0], [0], [1], [0, 0, 1, 1], [], []>} : vector<80x128xbf16>, vector<128x256xbf16>, vector<80x256xf32> -> vector<80x256xf32>
    %5 = vector.extract_strided_slice %4 {offsets = [1, 0], sizes = [79, 256], strides = [1, 1]} : vector<80x256xf32> to vector<79x256xf32>
    %6 = vector.extract_strided_slice %4 {offsets = [0, 0], sizes = [1, 256], strides = [1, 1]} : vector<80x256xf32> to vector<1x256xf32>
    %7 = tpu.concatenate %5, %6 in 0 : vector<79x256xf32>, vector<1x256xf32> -> vector<80x256xf32>
    %8 = arith.addf %2, %7 : vector<80x256xf32>
    %c0_6 = arith.constant 0 : index
    %c0_7 = arith.constant 0 : index
    %9 = vector.load %arg5[%c0_6, %c0_7] : memref<80x256xf32, #tpu.memory_space<vmem>>, vector<80x256xf32>
    tpu.vector_store %arg5[%c0_6, %c0_7], %8 {strides = array<i32>} : memref<80x256xf32, #tpu.memory_space<vmem>>, vector<80x256xf32>,
    return
  }
  func.func @transform_0(%arg0: i32, %arg1: i32) -> (i32, i32) {
    %c0_i32 = arith.constant 0 : i32
    %c0_i32_0 = arith.constant 0 : i32
    return %arg0, %c0_i32 : i32, i32
  }
  func.func @transform_1(%arg0: i32, %arg1: i32) -> (i32, i32) {
    %c0_i32 = arith.constant 0 : i32
    %c0_i32_0 = arith.constant 0 : i32
    return %c0_i32, %arg1 : i32, i32
  }
  func.func @transform_2(%arg0: i32, %arg1: i32) -> (i32, i32) {
    %c0_i32 = arith.constant 0 : i32
    %c0_i32_0 = arith.constant 0 : i32
    return %c0_i32, %arg1 : i32, i32
  }
  func.func @transform_3(%arg0: i32, %arg1: i32) -> (i32, i32) {
    %c0_i32 = arith.constant 0 : i32
    return %arg0, %arg1 : i32, i32
  }
}

</mosaic_0001>

<bundles_post_ra>
// kernel: custom-call
= control target key start
LH: loop header
LB: loop body
LE: loop exit
PB: predicated region body
PF: predicated region fallthrough
CT: control target
= control target key end

     0   :  { %s236_s0 = inlined_call_operand.vmem [shape: f32[2,4,9,128], index: 0, kind: input, shape index: {}]   ;;  %s237_s2 = inlined_call_operand.vmem [shape: c64[2,4,9,128], index: 2, kind: output, shape index: {}]   ;;  %s238_s1 = inlined_call_operand.vmem [shape: f32[2,4,9,128], index: 1, kind: input, shape index: {}]  }
   0x1   :  { %v4_v0 = vld [vmem:[%s236_s0] sm:$0xff]  ;;  %v80_v1 = vld [vmem:[%s236_s0 + $0x8] sm:$0xff]  ;;  %v82_v2 = vld [vmem:[%s236_s0 + $0x10] sm:$0xff] }
   0x2   :  { %5 = vst [vmem:[%s237_s2] sm:$0xff] %v4_v0  ;;  %v84_v3 = vld [vmem:[%s236_s0 + $0x18] sm:$0xff]  ;;  %v86_v4 = vld [vmem:[%s236_s0 + $0x20] sm:$0xff]  ;;  %v88_v5 = vld [vmem:[%s236_s0 + $0x28] sm:$0xff] }
   0x3   :  { %81 = vst [vmem:[%s237_s2 + $0x8] sm:$0xff] %v80_v1  ;;  %v90_v6 = vld [vmem:[%s236_s0 + $0x30] sm:$0xff]  ;;  %v92_v7 = vld [vmem:[%s236_s0 + $0x38] sm:$0xff]  ;;  %v94_v8 = vld [vmem:[%s236_s0 + $0x40] sm:$0xff] }
   0x4   :  { %83 = vst [vmem:[%s237_s2 + $0x10] sm:$0xff] %v82_v2  ;;  %v38_v9 = vld [vmem:[%s238_s1] sm:$0xff]  ;;  %v97_v10 = vld [vmem:[%s238_s1 + $0x8] sm:$0xff]  ;;  %v99_v11 = vld [vmem:[%s238_s1 + $0x10] sm:$0xff] }
   0x5   :  { %85 = vst [vmem:[%s237_s2 + $0x18] sm:$0xff] %v84_v3  ;;  %v101_v12 = vld [vmem:[%s238_s1 + $0x18] sm:$0xff]  ;;  %v103_v13 = vld [vmem:[%s238_s1 + $0x20] sm:$0xff]  ;;  %v105_v14 = vld [vmem:[%s238_s1 + $0x28] sm:$0xff] }
   0x6   :  { %87 = vst [vmem:[%s237_s2 + $0x20] sm:$0xff] %v86_v4  ;;  %v107_v15 = vld [vmem:[%s238_s1 + $0x30] sm:$0xff]  ;;  %v109_v16 = vld [vmem:[%s238_s1 + $0x38] sm:$0xff]  ;;  %v111_v17 = vld [vmem:[%s238_s1 + $0x40] sm:$0xff] }
   0x7   :  { %89 = vst [vmem:[%s237_s2 + $0x28] sm:$0xff] %v88_v5 }
   0x8   :  { %91 = vst [vmem:[%s237_s2 + $0x30] sm:$0xff] %v90_v6 }
   0x9   :  { %93 = vst [vmem:[%s237_s2 + $0x38] sm:$0xff] %v92_v7 }
   0xa   :  { %95 = vst [vmem:[%s237_s2 + $0x40] sm:$0xff] %v94_v8 }
   0xb   :  { %96 = vst [vmem:[%s237_s2 + $0x48] sm:$0xff] %v38_v9 }
   0xc   :  { %98 = vst [vmem:[%s237_s2 + $0x50] sm:$0xff] %v97_v10 }
   0xd   :  { %100 = vst [vmem:[%s237_s2 + $0x58] sm:$0xff] %v99_v11 }
   0xe   :  { %102 = vst [vmem:[%s237_s2 + $0x60] sm:$0xff] %v101_v12 }
   0xf   :  { %104 = vst [vmem:[%s237_s2 + $0x68] sm:$0xff] %v103_v13 }
  0x10   :  { %106 = vst [vmem:[%s237_s2 + $0x70] sm:$0xff] %v105_v14 }
  0x11   :  { %108 = vst [vmem:[%s237_s2 + $0x78] sm:$0xff] %v107_v15 }
  0x12   :  { %110 = vst [vmem:[%s237_s2 + $0x80] sm:$0xff] %v109_v16 }
  0x13   :  { %112 = vst [vmem:[%s237_s2 + $0x88] sm:$0xff] %v111_v17 }

// kernel: stft_array_forward.1
= control target key start
LH: loop header
LB: loop body
LE: loop exit
PB: predicated region body
PF: predicated region fallthrough
CT: control target
= control target key end

     0   :  { %vm254_vm0 = vcmask 1046528   ;;  %s995_s2 = inlined_call_operand.vmem [shape: bf16[128,256], index: 2, kind: input, shape index: {}]   ;;  %s996_s1 = inlined_call_operand.vmem [shape: bf16[128,256], index: 1, kind: input, shape index: {}]   ;;  %s997_s0 = inlined_call_operand.vmem [shape: bf16[80,128], index: 0, kind: input, shape index: {}]   ;;  %s998_s3 = inlined_call_operand.vmem [shape: f32[80,256], index: 3, kind: output, shape index: {}]  }
   0x1   :  { %v567_v0 = vld [vmem:[%s995_s2 + $0x70] sm:$0xf]  ;;  %v673_v1 = vld [vmem:[%s995_s2 + $0x74] sm:$0xf0]  ;;  %v672_v2 = vld [vmem:[%s995_s2 + $0x74] sm:$0xf] }
   0x2   :  { %v568_v3 = vor.u32 %v673_v1, %v567_v0  ;;  %v569_v4 = vld [vmem:[%s995_s2 + $0x78] sm:$0xf0]  ;;  %v631_v5 = vld [vmem:[%s996_s1 + $0x70] sm:$0xf]  ;;  %v657_v6 = vld [vmem:[%s996_s1 + $0x74] sm:$0xf0] }
   0x3   :  { %v572_v7 = vor.u32 %v672_v2, %v569_v4  ;;  %v632_v8 = vor.u32 %v657_v6, %v631_v5  ;;  %v656_v9 = vld [vmem:[%s996_s1 + $0x74] sm:$0xf]  ;;  %v633_v10 = vld [vmem:[%s996_s1 + $0x78] sm:$0xf0]  ;;  %v559_v11 = vld [vmem:[%s995_s2 + $0x60] sm:$0xf] }
   0x4   :  { %166 = vmatpush.bf16.msra.mxu0 %v568_v3  ;;  %v636_v12 = vor.u32 %v656_v9, %v633_v10  ;;  %v671_v13 = vld [vmem:[%s995_s2 + $0x64] sm:$0xf0]  ;;  %v670_v14 = vld [vmem:[%s995_s2 + $0x64] sm:$0xf]  ;;  %v561_v15 = vld [vmem:[%s995_s2 + $0x68] sm:$0xf0] }
   0x5   :  { %200 = vmatpush.bf16.msra.mxu1 %v572_v7  ;;  %397 = vmatpush.bf16.msra.mxu2 %v632_v8  ;;  %v560_v16 = vor.u32 %v671_v13, %v559_v11  ;;  %v564_v17 = vor.u32 %v670_v14, %v561_v15  ;;  %v623_v18 = vld [vmem:[%s996_s1 + $0x60] sm:$0xf]  ;;  %v655_v19 = vld [vmem:[%s996_s1 + $0x64] sm:$0xf0]  ;;  %v654_v20 = vld [vmem:[%s996_s1 + $0x64] sm:$0xf] }
   0x6   :  { %431 = vmatpush.bf16.msra.mxu3 %v636_v12  ;;  %v624_v21 = vor.u32 %v655_v19, %v623_v18  ;;  %v625_v22 = vld [vmem:[%s996_s1 + $0x68] sm:$0xf0]  ;;  %v551_v23 = vld [vmem:[%s995_s2 + $0x50] sm:$0xf]  ;;  %v669_v24 = vld [vmem:[%s995_s2 + $0x54] sm:$0xf0] }
   0x7   :  { %v628_v25 = vor.u32 %v654_v20, %v625_v22  ;;  %v668_v26 = vld [vmem:[%s995_s2 + $0x54] sm:$0xf]  ;;  %v553_v27 = vld [vmem:[%s995_s2 + $0x58] sm:$0xf0]  ;;  %v615_v28 = vld [vmem:[%s996_s1 + $0x50] sm:$0xf]  ;;  %v552_v29 = vor.u32 %v669_v24, %v551_v23 }
   0x8   :  { %167 = vmatpush.bf16.msra.mxu0 %v560_v16  ;;  %v653_v30 = vld [vmem:[%s996_s1 + $0x54] sm:$0xf0]  ;;  %v652_v31 = vld [vmem:[%s996_s1 + $0x54] sm:$0xf]  ;;  %v617_v32 = vld [vmem:[%s996_s1 + $0x58] sm:$0xf0]  ;;  %v556_v33 = vor.u32 %v668_v26, %v553_v27 }
   0x9   :  { %201 = vmatpush.bf16.msra.mxu1 %v564_v17  ;;  %398 = vmatpush.bf16.msra.mxu2 %v624_v21  ;;  %v616_v34 = vor.u32 %v653_v30, %v615_v28  ;;  %v543_v35 = vld [vmem:[%s995_s2 + $0x40] sm:$0xf]  ;;  %v667_v36 = vld [vmem:[%s995_s2 + $0x44] sm:$0xf0]  ;;  %v666_v37 = vld [vmem:[%s995_s2 + $0x44] sm:$0xf]  ;;  %v620_v38 = vor.u32 %v652_v31, %v617_v32 }
   0xa   :  { %432 = vmatpush.bf16.msra.mxu3 %v628_v25  ;;  %v545_v39 = vld [vmem:[%s995_s2 + $0x48] sm:$0xf0]  ;;  %v607_v40 = vld [vmem:[%s996_s1 + $0x40] sm:$0xf]  ;;  %v651_v41 = vld [vmem:[%s996_s1 + $0x44] sm:$0xf0]  ;;  %v544_v44 = vor.u32 %v667_v36, %v543_v35 }
   0xb   :  { %v650_v42 = vld [vmem:[%s996_s1 + $0x44] sm:$0xf]  ;;  %v609_v43 = vld [vmem:[%s996_s1 + $0x48] sm:$0xf0]  ;;  %v548_v45 = vor.u32 %v666_v37, %v545_v39  ;;  %v608_v46 = vor.u32 %v651_v41, %v607_v40  ;;  %v535_v47 = vld [vmem:[%s995_s2 + $0x30] sm:$0xf] }
   0xc   :  { %168 = vmatpush.bf16.msra.mxu0 %v552_v29  ;;  %v665_v48 = vld [vmem:[%s995_s2 + $0x34] sm:$0xf0]  ;;  %v664_v49 = vld [vmem:[%s995_s2 + $0x34] sm:$0xf]  ;;  %v612_v50 = vor.u32 %v650_v42, %v609_v43  ;;  %v537_v51 = vld [vmem:[%s995_s2 + $0x38] sm:$0xf0] }
   0xd   :  { %202 = vmatpush.bf16.msra.mxu1 %v556_v33  ;;  %399 = vmatpush.bf16.msra.mxu2 %v616_v34  ;;  %v599_v52 = vld [vmem:[%s996_s1 + $0x30] sm:$0xf]  ;;  %v649_v53 = vld [vmem:[%s996_s1 + $0x34] sm:$0xf0]  ;;  %v648_v54 = vld [vmem:[%s996_s1 + $0x34] sm:$0xf]  ;;  %v536_v56 = vor.u32 %v665_v48, %v535_v47  ;;  %v540_v57 = vor.u32 %v664_v49, %v537_v51 }
   0xe   :  { %433 = vmatpush.bf16.msra.mxu3 %v620_v38  ;;  %v601_v55 = vld [vmem:[%s996_s1 + $0x38] sm:$0xf0]  ;;  %v600_v58 = vor.u32 %v649_v53, %v599_v52  ;;  %v527_v59 = vld [vmem:[%s995_s2 + $0x20] sm:$0xf]  ;;  %v663_v60 = vld [vmem:[%s995_s2 + $0x24] sm:$0xf0] }
   0xf   :  { %v662_v61 = vld [vmem:[%s995_s2 + $0x24] sm:$0xf]  ;;  %v604_v62 = vor.u32 %v648_v54, %v601_v55  ;;  %v529_v63 = vld [vmem:[%s995_s2 + $0x28] sm:$0xf0]  ;;  %v591_v0 = vld [vmem:[%s996_s1 + $0x20] sm:$0xf]  ;;  %v528_v4 = vor.u32 %v663_v60, %v527_v59 }
  0x10   :  { %169 = vmatpush.bf16.msra.mxu0 %v544_v44  ;;  %v647_v1 = vld [vmem:[%s996_s1 + $0x24] sm:$0xf0]  ;;  %v646_v2 = vld [vmem:[%s996_s1 + $0x24] sm:$0xf]  ;;  %v593_v3 = vld [vmem:[%s996_s1 + $0x28] sm:$0xf0]  ;;  %v532_v5 = vor.u32 %v662_v61, %v529_v63 }
  0x11   :  { %203 = vmatpush.bf16.msra.mxu1 %v548_v45  ;;  %400 = vmatpush.bf16.msra.mxu2 %v608_v46  ;;  %v592_v6 = vor.u32 %v647_v1, %v591_v0  ;;  %v519_v7 = vld [vmem:[%s995_s2 + $0x10] sm:$0xf]  ;;  %v661_v8 = vld [vmem:[%s995_s2 + $0x14] sm:$0xf0]  ;;  %v660_v9 = vld [vmem:[%s995_s2 + $0x14] sm:$0xf]  ;;  %v596_v10 = vor.u32 %v646_v2, %v593_v3 }
  0x12   :  { %434 = vmatpush.bf16.msra.mxu3 %v612_v50  ;;  %v521_v11 = vld [vmem:[%s995_s2 + $0x18] sm:$0xf0]  ;;  %v583_v12 = vld [vmem:[%s996_s1 + $0x10] sm:$0xf]  ;;  %v645_v13 = vld [vmem:[%s996_s1 + $0x14] sm:$0xf0]  ;;  %v520_v16 = vor.u32 %v661_v8, %v519_v7 }
  0x13   :  { %v644_v14 = vld [vmem:[%s996_s1 + $0x14] sm:$0xf]  ;;  %v585_v15 = vld [vmem:[%s996_s1 + $0x18] sm:$0xf0]  ;;  %v524_v17 = vor.u32 %v660_v9, %v521_v11  ;;  %v584_v18 = vor.u32 %v645_v13, %v583_v12  ;;  %v511_v19 = vld [vmem:[%s995_s2] sm:$0xf] }
  0x14   :  { %170 = vmatpush.bf16.msra.mxu0 %v536_v56  ;;  %v659_v20 = vld [vmem:[%s995_s2 + $0x4] sm:$0xf0]  ;;  %v658_v21 = vld [vmem:[%s995_s2 + $0x4] sm:$0xf]  ;;  %v588_v22 = vor.u32 %v644_v14, %v585_v15  ;;  %v513_v23 = vld [vmem:[%s995_s2 + $0x8] sm:$0xf0] }
  0x15   :  { %204 = vmatpush.bf16.msra.mxu1 %v540_v57  ;;  %401 = vmatpush.bf16.msra.mxu2 %v600_v58  ;;  %v575_v24 = vld [vmem:[%s996_s1] sm:$0xf]  ;;  %v643_v25 = vld [vmem:[%s996_s1 + $0x4] sm:$0xf0]  ;;  %v642_v26 = vld [vmem:[%s996_s1 + $0x4] sm:$0xf]  ;;  %v512_v28 = vor.u32 %v659_v20, %v511_v19  ;;  %v516_v29 = vor.u32 %v658_v21, %v513_v23 }
  0x16   :  { %435 = vmatpush.bf16.msra.mxu3 %v604_v62  ;;  %v577_v27 = vld [vmem:[%s996_s1 + $0x8] sm:$0xf0]  ;;  %v576_v30 = vor.u32 %v643_v25, %v575_v24  ;;  %v637_v32 = vld [vmem:[%s997_s0] sm:$0xff]  ;;  %v639_v34 = vld [vmem:[%s997_s0 + $0x10] sm:$0xff] }
  0x17   :  { %v580_v31 = vor.u32 %v642_v26, %v577_v27  ;;  %v638_v33 = vld [vmem:[%s997_s0 + $0x8] sm:$0xff]  ;;  %v640_v35 = vld [vmem:[%s997_s0 + $0x18] sm:$0xff]  ;;  %v641_v36 = vld [vmem:[%s997_s0 + $0x20] sm:$0xff] }
  0x18   :  { %171 = vmatpush.bf16.msra.mxu0 %v528_v4 }
  0x19   :  { %205 = vmatpush.bf16.msra.mxu1 %v532_v5  ;;  %402 = vmatpush.bf16.msra.mxu2 %v592_v6 }
  0x1a   :  { %436 = vmatpush.bf16.msra.mxu3 %v596_v10 }
  0x1c   :  { %172 = vmatpush.bf16.msra.mxu0 %v520_v16 }
  0x1d   :  { %206 = vmatpush.bf16.msra.mxu1 %v524_v17  ;;  %403 = vmatpush.bf16.msra.mxu2 %v584_v18 }
  0x1e   :  { %437 = vmatpush.bf16.msra.mxu3 %v588_v22 }
  0x20   :  { %173 = vmatpush.bf16.msra.mxu0 %v512_v28 }
  0x21   :  { %207 = vmatpush.bf16.msra.mxu1 %v516_v29  ;;  %404 = vmatpush.bf16.msra.mxu2 %v576_v30 }
  0x22   :  { %438 = vmatpush.bf16.msra.mxu3 %v580_v31 }
  0x23   :  { %174 = vmatmul.bf16.vlgmr.msra.gmra.mxu0 %v637_v32 }
  0x24   :  { %208 = vmatmul.bf16.vlgmr.msra.gmra.mxu1 %v637_v32  ;;  %405 = vmatmul.bf16.vlgmr.msra.gmra.mxu2 %v637_v32 }
  0x25   :  { %439 = vmatmul.bf16.vlgmr.msra.gmra.mxu3 %v637_v32 }
  0x33   :  { %179 = vmatmul.bf16.gmra.mxu0 %v638_v33 }
  0x34   :  { %213 = vmatmul.bf16.gmra.mxu1 %v638_v33  ;;  %410 = vmatmul.bf16.gmra.mxu2 %v638_v33 }
  0x35   :  { %444 = vmatmul.bf16.gmra.mxu3 %v638_v33 }
  0x43   :  { %184 = vmatmul.bf16.gmra.mxu0 %v639_v34 }
  0x44   :  { %218 = vmatmul.bf16.gmra.mxu1 %v639_v34  ;;  %415 = vmatmul.bf16.gmra.mxu2 %v639_v34 }
  0x45   :  { %449 = vmatmul.bf16.gmra.mxu3 %v639_v34 }
  0x53   :  { %189 = vmatmul.bf16.gmra.mxu0 %v640_v35 }
  0x54   :  { %223 = vmatmul.bf16.gmra.mxu1 %v640_v35  ;;  %420 = vmatmul.bf16.gmra.mxu2 %v640_v35 }
  0x55   :  { %454 = vmatmul.bf16.gmra.mxu3 %v640_v35 }
  0x63   :  { %194 = vmatmul.bf16.gmra.mxu0 %v641_v36 }
  0x64   :  { %228 = vmatmul.bf16.gmra.mxu1 %v641_v36  ;;  %425 = vmatmul.bf16.gmra.mxu2 %v641_v36 }
  0x65   :  { %459 = vmatmul.bf16.gmra.mxu3 %v641_v36 }
  0xa0   :  { %v901_v37 = vpop.f32.mrf.mxu0 }
  0xa1   :  { %v903_v38 = vpop.f32.mrf.mxu1  ;;  %v255_v42 = vrot.slane %v901_v37, 1 }
  0xa2   :  { %v258_v45 = vrot.slane %v903_v38, 1 }
  0xa7   :  { %v406_v39 = vpop.f32.mrf.mxu2 }
  0xa8   :  { %v440_v40 = vpop.f32.mrf.mxu3  ;;  %v177_v41 = vpop.f32.mrf.mxu0 }
  0xa9   :  { %v256_v43 = vrot.slane %v177_v41, 1  ;;  %v211_v44 = vpop.f32.mrf.mxu1 }
  0xaa   :  { %v259_v46 = vrot.slane %v211_v44, 1 }
  0xab   :  { %v257_v47 = vsel %vm254_vm0, %v255_v42, %v256_v43 }
  0xac   :  { %v407_v48 = vadd.f32 %v406_v39, %v257_v47  ;;  %v260_v49 = vsel %vm254_vm0, %v258_v45, %v259_v46 }
  0xad   :  { %v441_v50 = vadd.f32 %v440_v40, %v260_v49 }
  0xae   :  { %465 = vst [vmem:[%s998_s3] sm:$0xff] %v407_v48 }
  0xaf   :  { %466 = vst [vmem:[%s998_s3 + $0x8] sm:$0xff] %v441_v50  ;;  %v408_v51 = vpop.f32.mrf.mxu2 }
  0xb0   :  { %v442_v52 = vpop.f32.mrf.mxu3  ;;  %v180_v53 = vpop.f32.mrf.mxu0 }
  0xb1   :  { %v261_v54 = vrot.slane %v180_v53, 1  ;;  %v214_v55 = vpop.f32.mrf.mxu1 }
  0xb2   :  { %v263_v56 = vrot.slane %v214_v55, 1 }
  0xb3   :  { %v262_v57 = vsel %vm254_vm0, %v256_v43, %v261_v54 }
  0xb4   :  { %v409_v58 = vadd.f32 %v408_v51, %v262_v57  ;;  %v264_v59 = vsel %vm254_vm0, %v259_v46, %v263_v56 }
  0xb5   :  { %v443_v60 = vadd.f32 %v442_v52, %v264_v59 }
  0xb6   :  { %467 = vst [vmem:[%s998_s3 + $0x10] sm:$0xff] %v409_v58 }
  0xb7   :  { %468 = vst [vmem:[%s998_s3 + $0x18] sm:$0xff] %v443_v60  ;;  %v411_v61 = vpop.f32.mrf.mxu2 }
  0xb8   :  { %v445_v62 = vpop.f32.mrf.mxu3  ;;  %v182_v63 = vpop.f32.mrf.mxu0 }
  0xb9   :  { %v265_v0 = vrot.slane %v182_v63, 1  ;;  %v216_v1 = vpop.f32.mrf.mxu1 }
  0xba   :  { %v267_v2 = vrot.slane %v216_v1, 1 }
  0xbb   :  { %v266_v3 = vsel %vm254_vm0, %v261_v54, %v265_v0 }
  0xbc   :  { %v412_v4 = vadd.f32 %v411_v61, %v266_v3  ;;  %v268_v5 = vsel %vm254_vm0, %v263_v56, %v267_v2 }
  0xbd   :  { %v446_v6 = vadd.f32 %v445_v62, %v268_v5 }
  0xbe   :  { %469 = vst [vmem:[%s998_s3 + $0x20] sm:$0xff] %v412_v4 }
  0xbf   :  { %470 = vst [vmem:[%s998_s3 + $0x28] sm:$0xff] %v446_v6  ;;  %v413_v7 = vpop.f32.mrf.mxu2 }
  0xc0   :  { %v447_v8 = vpop.f32.mrf.mxu3  ;;  %v185_v9 = vpop.f32.mrf.mxu0 }
  0xc1   :  { %v269_v10 = vrot.slane %v185_v9, 1  ;;  %v219_v11 = vpop.f32.mrf.mxu1 }
  0xc2   :  { %v271_v12 = vrot.slane %v219_v11, 1 }
  0xc3   :  { %v270_v13 = vsel %vm254_vm0, %v265_v0, %v269_v10 }
  0xc4   :  { %v414_v14 = vadd.f32 %v413_v7, %v270_v13  ;;  %v272_v15 = vsel %vm254_vm0, %v267_v2, %v271_v12 }
  0xc5   :  { %v448_v16 = vadd.f32 %v447_v8, %v272_v15 }
  0xc6   :  { %471 = vst [vmem:[%s998_s3 + $0x30] sm:$0xff] %v414_v14 }
  0xc7   :  { %472 = vst [vmem:[%s998_s3 + $0x38] sm:$0xff] %v448_v16  ;;  %v416_v17 = vpop.f32.mrf.mxu2 }
  0xc8   :  { %v450_v18 = vpop.f32.mrf.mxu3  ;;  %v187_v19 = vpop.f32.mrf.mxu0 }
  0xc9   :  { %v273_v20 = vrot.slane %v187_v19, 1  ;;  %v221_v21 = vpop.f32.mrf.mxu1 }
  0xca   :  { %v275_v22 = vrot.slane %v221_v21, 1 }
  0xcb   :  { %v274_v23 = vsel %vm254_vm0, %v269_v10, %v273_v20 }
  0xcc   :  { %v417_v24 = vadd.f32 %v416_v17, %v274_v23  ;;  %v276_v25 = vsel %vm254_vm0, %v271_v12, %v275_v22 }
  0xcd   :  { %v451_v26 = vadd.f32 %v450_v18, %v276_v25 }
  0xce   :  { %473 = vst [vmem:[%s998_s3 + $0x40] sm:$0xff] %v417_v24 }
  0xcf   :  { %474 = vst [vmem:[%s998_s3 + $0x48] sm:$0xff] %v451_v26  ;;  %v418_v27 = vpop.f32.mrf.mxu2 }
  0xd0   :  { %v452_v28 = vpop.f32.mrf.mxu3  ;;  %v190_v29 = vpop.f32.mrf.mxu0 }
  0xd1   :  { %v277_v30 = vrot.slane %v190_v29, 1  ;;  %v224_v31 = vpop.f32.mrf.mxu1 }
  0xd2   :  { %v279_v32 = vrot.slane %v224_v31, 1 }
  0xd3   :  { %v278_v33 = vsel %vm254_vm0, %v273_v20, %v277_v30 }
  0xd4   :  { %v419_v34 = vadd.f32 %v418_v27, %v278_v33  ;;  %v280_v35 = vsel %vm254_vm0, %v275_v22, %v279_v32 }
  0xd5   :  { %v453_v36 = vadd.f32 %v452_v28, %v280_v35 }
  0xd6   :  { %475 = vst [vmem:[%s998_s3 + $0x50] sm:$0xff] %v419_v34 }
  0xd7   :  { %476 = vst [vmem:[%s998_s3 + $0x58] sm:$0xff] %v453_v36  ;;  %v421_v39 = vpop.f32.mrf.mxu2 }
  0xd8   :  { %v455_v40 = vpop.f32.mrf.mxu3  ;;  %v192_v41 = vpop.f32.mrf.mxu0 }
  0xd9   :  { %v281_v43 = vrot.slane %v192_v41, 1  ;;  %v226_v44 = vpop.f32.mrf.mxu1 }
  0xda   :  { %v283_v46 = vrot.slane %v226_v44, 1 }
  0xdb   :  { %v282_v47 = vsel %vm254_vm0, %v277_v30, %v281_v43 }
  0xdc   :  { %v422_v48 = vadd.f32 %v421_v39, %v282_v47  ;;  %v284_v49 = vsel %vm254_vm0, %v279_v32, %v283_v46 }
  0xdd   :  { %v456_v50 = vadd.f32 %v455_v40, %v284_v49 }
  0xde   :  { %477 = vst [vmem:[%s998_s3 + $0x60] sm:$0xff] %v422_v48 }
  0xdf   :  { %478 = vst [vmem:[%s998_s3 + $0x68] sm:$0xff] %v456_v50  ;;  %v423_v51 = vpop.f32.mrf.mxu2 }
  0xe0   :  { %v457_v52 = vpop.f32.mrf.mxu3  ;;  %v195_v53 = vpop.f32.mrf.mxu0 }
  0xe1   :  { %v285_v54 = vrot.slane %v195_v53, 1  ;;  %v229_v55 = vpop.f32.mrf.mxu1 }
  0xe2   :  { %v287_v56 = vrot.slane %v229_v55, 1 }
  0xe3   :  { %v286_v57 = vsel %vm254_vm0, %v281_v43, %v285_v54 }
  0xe4   :  { %v424_v58 = vadd.f32 %v423_v51, %v286_v57  ;;  %v288_v59 = vsel %vm254_vm0, %v283_v46, %v287_v56 }
  0xe5   :  { %v458_v60 = vadd.f32 %v457_v52, %v288_v59 }
  0xe6   :  { %479 = vst [vmem:[%s998_s3 + $0x70] sm:$0xff] %v424_v58 }
  0xe7   :  { %480 = vst [vmem:[%s998_s3 + $0x78] sm:$0xff] %v458_v60  ;;  %v426_v61 = vpop.f32.mrf.mxu2 }
  0xe8   :  { %v460_v62 = vpop.f32.mrf.mxu3  ;;  %v197_v63 = vpop.f32.mrf.mxu0 }
  0xe9   :  { %v289_v0 = vrot.slane %v197_v63, 1  ;;  %v231_v1 = vpop.f32.mrf.mxu1 }
  0xea   :  { %v291_v2 = vrot.slane %v231_v1, 1 }
  0xeb   :  { %v290_v3 = vsel %vm254_vm0, %v285_v54, %v289_v0  ;;  %v315_v7 = vsel %vm254_vm0, %v289_v0, %v255_v42 }
  0xec   :  { %v427_v4 = vadd.f32 %v426_v61, %v290_v3  ;;  %v292_v5 = vsel %vm254_vm0, %v287_v56, %v291_v2  ;;  %v316_v10 = vsel %vm254_vm0, %v291_v2, %v258_v45 }
  0xed   :  { %v461_v6 = vadd.f32 %v460_v62, %v292_v5 }
  0xee   :  { %481 = vst [vmem:[%s998_s3 + $0x80] sm:$0xff] %v427_v4 }
  0xef   :  { %482 = vst [vmem:[%s998_s3 + $0x88] sm:$0xff] %v461_v6  ;;  %v428_v8 = vpop.f32.mrf.mxu2 }
  0xf0   :  { %v429_v9 = vadd.f32 %v428_v8, %v315_v7  ;;  %v462_v11 = vpop.f32.mrf.mxu3 }
  0xf1   :  { %v463_v12 = vadd.f32 %v462_v11, %v316_v10 }
  0xf2   :  { %483 = vst [vmem:[%s998_s3 + $0x90] sm:$0xff] %v429_v9 }
  0xf3   :  { %484 = vst [vmem:[%s998_s3 + $0x98] sm:$0xff] %v463_v12 }

</bundles_post_ra>
